<compile_context>
chip_gen: v5e
topology: v5e:2x2
jax: 0.10.0
libtpu: 0.0.40
codegen_flags: <defaults>
</compile_context>

<pallas_src>
import functools

import jax
import jax.numpy as jnp
from jax.experimental import pallas as pl
from jax.experimental.pallas import tpu as pltpu


def _contact_kernel(xr_ref, xc_ref, wp_ref, b_ref, out_ref, lhs_ref):
    # xr_ref : (1, TI, D)   row block of x (compute dtype)
    # xc_ref : (1, TJ, D)   col block of x (compute dtype)
    # wp_ref : (2, D)       product-feature half of the linear weight (f32)
    # b_ref  : (2,)         bias scalars in SMEM
    # out_ref: (1, 2, TI, TJ) symmetric (pre-crop) logits
    # lhs_ref: (2*TI, D)    VMEM scratch: channel-stacked, Wp-scaled row block
    ti = xr_ref.shape[1]
    tj = xc_ref.shape[1]

    # The scaled lhs depends only on (b, i); rebuild it only when the inner j loop
    # restarts (j axis is "arbitrary", so this is valid under megacore sharding).
    @pl.when(pl.program_id(2) == 0)
    def _():
        xi = xr_ref[0]                                   # (TI, D)
        wp = wp_ref[...]                                 # (2, D) f32
        lhs_ref[:ti, :] = (xi * wp[0:1, :]).astype(lhs_ref.dtype)
        lhs_ref[ti:, :] = (xi * wp[1:2, :]).astype(lhs_ref.dtype)

    # NT matmul: both output channels fused along the MXU M dim, contracting D of
    # both operands (no materialized transpose), f32 accumulation.
    res = jax.lax.dot_general(
        lhs_ref[...], xc_ref[0],
        dimension_numbers=(((1,), (1,)), ((), ())),
        preferred_element_type=jnp.float32)              # (2*TI, TJ)

    # Fold the per-channel bias via a (2*TI, 1) column, then one lane-dense store
    # with a free sublane regroup (ti % 8 == 0 in all tiled configs).
    row = jax.lax.broadcasted_iota(jnp.int32, (2 * ti, 1), 0)
    bias_col = jnp.where(row < ti, b_ref[0], b_ref[1])   # (2*TI, 1) f32
    out_ref[0] = (res + bias_col).reshape(2, ti, tj).astype(out_ref.dtype)


def _tile_candidates(L, align, max_tile=512):
    """Descending tile candidates along one sequence axis: full extent (always a
    legal block) first if it fits max_tile, then aligned divisors of L."""
    cands = []
    if L <= max_tile:
        cands.append(L)
    t = (min(L, max_tile) // align) * align
    while t >= align:
        if L % t == 0 and t not in cands:
            cands.append(t)
        t -= align
    return cands or [L]


def _vmem_footprint(ti, tj, D, in_sz, out_sz):
    row_blk = 2 * ti * D * in_sz           # row block, double-buffered
    col_blk = 2 * tj * D * in_sz           # col block, double-buffered
    out_blk = 2 * 2 * ti * tj * out_sz     # output block, double-buffered
    lhs_scr = 2 * ti * D * in_sz           # scaled-lhs scratch
    res_tmp = 2 * ti * tj * 4              # f32 matmul result temp
    consts = 2 * D * 4 + 4096              # Wp + bias + slack
    return row_blk + col_blk + out_blk + lhs_scr + res_tmp + consts


def _choose_tiles(Lp, D, in_sz, out_sz, budget, sub_align, max_tile=512):
    def fits(a, b):
        return _vmem_footprint(a, b, D, in_sz, out_sz) <= budget

    ti_c = _tile_candidates(Lp, sub_align, max_tile)
    tj_c = _tile_candidates(Lp, 128, max_tile)
    # Prefer large ti (col-block re-fetch traffic ~ L/ti and is independent of tj);
    # shrink tj before ti when VMEM forces a choice.
    for ti in ti_c:
        for tj in tj_c:
            if fits(ti, tj):
                return ti, tj
    return ti_c[-1], tj_c[-1]


@functools.partial(
    jax.jit,
    static_argnames=("tile_i", "tile_j", "mxu_bf16", "channels_last", "out_dtype"))
def protein_contact_map_decoder(x, weight, bias, *, tile_i=None, tile_j=None,
                                mxu_bf16=None, channels_last=True, out_dtype=None):
    """x: (B, L, D), weight: (2, 2D), bias: (2,).

    Returns (B, L-2, L-2, 2) when channels_last=True (PyTorch layout), else the
    lane-dense (B, 2, L-2, L-2) layout (cheaper: skips the channels-last transpose).
    mxu_bf16=None -> auto (bf16 MXU operands when D >= 256).  out_dtype lets the
    caller request e.g. bf16 logits to halve output HBM traffic."""
    B, L, D = x.shape
    assert weight.shape == (2, 2 * D), weight.shape
    assert bias.shape == (2,), bias.shape
    assert L >= 3, "need at least 3 residues for the border crop"

    if mxu_bf16 is None:
        mxu_bf16 = bool(D >= 256) and jnp.issubdtype(x.dtype, jnp.floating)
    compute_dtype = jnp.bfloat16 if mxu_bf16 else x.dtype
    out_dtype = jnp.dtype(out_dtype) if out_dtype is not None else jnp.dtype(x.dtype)

    # Only the product-feature half of the weight matters: the Wd (difference)
    # contribution is antisymmetric and cancels exactly under (pred + pred^T)/2.
    wp = weight[:, :D].astype(jnp.float32)               # (2, D)
    b2 = bias.astype(jnp.float32)                        # (2,) -> SMEM

    # Cast once in HBM so kernel operands (and input DMAs) are already in MXU dtype.
    x_in = x.astype(compute_dtype)

    # Pad awkward L up to a multiple of 128; padded (zero) rows only ever land in
    # output positions >= L, which the border crop discards.
    Lp = L
    if L > 512 and L % 128 != 0:
        Lp = ((L + 127) // 128) * 128
    if Lp != L:
        x_in = jnp.pad(x_in, ((0, 0), (0, Lp - L), (0, 0)))

    in_sz = jnp.dtype(compute_dtype).itemsize
    out_sz = out_dtype.itemsize
    sub_align = {4: 8, 2: 16, 1: 32}.get(in_sz, 8)       # dtype-aware sublane tile

    try:
        vmem_cap = int(pltpu.get_tpu_info().vmem_capacity_bytes)
    except Exception:                                    # pragma: no cover
        vmem_cap = 64 << 20                              # v7x-safe fallback
    budget = int(vmem_cap * 0.70)                        # headroom for Mosaic scratch

    if tile_i is not None or tile_j is not None:
        ti = tile_i if tile_i is not None else min(Lp, 512)
        tj = tile_j if tile_j is not None else min(Lp, 512)
        for name, t, align in (("tile_i", ti, sub_align), ("tile_j", tj, 128)):
            if Lp % t != 0:
                raise ValueError(f"{name}={t} must divide (padded) L={Lp}")
            if t != Lp and t % align != 0:
                raise ValueError(f"{name}={t} must be a multiple of {align} or == L")
    else:
        ti, tj = _choose_tiles(Lp, D, in_sz, out_sz, budget, sub_align)

    footprint = _vmem_footprint(ti, tj, D, in_sz, out_sz)
    vmem_limit = max(32 << 20, footprint + (4 << 20))
    vmem_limit = min(vmem_limit, int(vmem_cap * 0.85))
    vmem_limit = int(max(vmem_limit, min(footprint + (2 << 20), vmem_cap)))

    grid = (B, Lp // ti, Lp // tj)

    pred = pl.pallas_call(
        _contact_kernel,
        out_shape=jax.ShapeDtypeStruct((B, 2, Lp, Lp), out_dtype),
        grid_spec=pltpu.PrefetchScalarGridSpec(
            num_scalar_prefetch=0,
            grid=grid,
            in_specs=[
                pl.BlockSpec((1, ti, D), lambda b, i, j: (b, i, 0)),    # row block
                pl.BlockSpec((1, tj, D), lambda b, i, j: (b, j, 0)),    # col block
                pl.BlockSpec((2, D), lambda b, i, j: (0, 0)),           # Wp
                pl.BlockSpec(memory_space=pltpu.MemorySpace.SMEM),      # bias (2,)
            ],
            out_specs=pl.BlockSpec((1, 2, ti, tj), lambda b, i, j: (b, 0, i, j)),
            scratch_shapes=[pltpu.VMEM((2 * ti, D), compute_dtype)],
        ),
        compiler_params=pltpu.CompilerParams(
            dimension_semantics=("parallel", "parallel", "arbitrary"),
            vmem_limit_bytes=vmem_limit),
    )(x_in, x_in, wp, b2)                                               # (B, 2, Lp, Lp)

    # Kernel output is already symmetric; crop the border (also discards padding).
    pred = pred[:, :, 1:L - 1, 1:L - 1]                                 # (B, 2, L-2, L-2)
    if channels_last:
        # PyTorch output layout. For perf-critical pipelines prefer
        # channels_last=False and consume the lane-dense (B, 2, L-2, L-2) directly.
        pred = jnp.transpose(pred, (0, 2, 3, 1))                        # (B, L-2, L-2, 2)
    return pred


def _reference(x, weight, bias):
    prod = x[:, :, None, :] * x[:, None, :, :]
    diff = x[:, :, None, :] - x[:, None, :, :]
    pf = jnp.concatenate([prod, diff], axis=-1)                         # (B, L, L, 2D)
    pred = jnp.einsum("blmf,kf->blmk", pf, weight) + bias               # (B, L, L, 2)
    pred = (pred + jnp.swapaxes(pred, 1, 2)) * 0.5
    return pred[:, 1:-1, 1:-1, :]


if __name__ == "__main__":
    B, L, D = 2, 8, 32   # batch, seq length, embed_dim

    key = jax.random.PRNGKey(0)
    kx, kw, kb = jax.random.split(key, 3)

    x = jax.random.normal(kx, (B, L, D), dtype=jnp.float32)

    # deterministic nn.Linear(2D, 2)-style init: U(-1/sqrt(fan_in), 1/sqrt(fan_in))
    fan_in = 2 * D
    bound = 1.0 / jnp.sqrt(jnp.float32(fan_in))
    weight = jax.random.uniform(kw, (2, 2 * D), jnp.float32, -bound, bound)
    bias = jax.random.uniform(kb, (2,), jnp.float32, -bound, bound)

    out = protein_contact_map_decoder(x, weight, bias)
    out = jax.block_until_ready(out)

    ref = _reference(x, weight, bias)
    assert out.shape == (B, L - 2, L - 2, 2), out.shape
    assert jnp.allclose(out, ref, atol=1e-5, rtol=1e-5), float(jnp.max(jnp.abs(out - ref)))

    print("KERNEL_OK")
</pallas_src>

<mosaic_0001>
module attributes {stable_mosaic.version = 11 : i64} {
  func.func @_contact_kernel(%arg0: i32, %arg1: i32, %arg2: i32, %arg3: memref<1x8x32xf32, #tpu.memory_space<vmem>>, %arg4: memref<1x8x32xf32, #tpu.memory_space<vmem>>, %arg5: memref<2x32xf32, #tpu.memory_space<vmem>>, %arg6: memref<2xf32, #tpu.memory_space<smem>>, %arg7: memref<1x2x8x8xf32, #tpu.memory_space<vmem>>, %arg8: memref<16x32xf32, #tpu.memory_space<vmem>>) attributes {dimension_semantics = [#tpu.dimension_semantics<parallel>, #tpu.dimension_semantics<parallel>, #tpu.dimension_semantics<arbitrary>], iteration_bounds = array<i64: 2, 1, 1>, scalar_prefetch = 0 : i64, scratch_operands = 1 : i64, tpu.core_type = #tpu.core_type<tc>, window_params = [{transform_indices = @transform_0, window_bounds = array<i64: 1, 8, 32>}, {transform_indices = @transform_1, window_bounds = array<i64: 1, 8, 32>}, {pipeline_mode = #tpu.pipeline_mode<synchronous>, transform_indices = @transform_2, window_bounds = array<i64: 2, 32>}, {transform_indices = @transform_3, window_bounds = array<i64: 2>}, {transform_indices = @transform_4, window_bounds = array<i64: 1, 2, 8, 8>}]} {
    %c0_i32 = arith.constant 0 : i32
    %0 = arith.cmpi eq, %arg2, %c0_i32 : i32
    %1 = arith.extui %0 : i1 to i32
    %c0_i32_0 = arith.constant 0 : i32
    %2 = arith.cmpi ne, %1, %c0_i32_0 : i32
    scf.if %2 {
      %c0_10 = arith.constant 0 : index
      %c0_11 = arith.constant 0 : index
      %c0_12 = arith.constant 0 : index
      %21 = vector.load %arg3[%c0_10, %c0_11, %c0_12] : memref<1x8x32xf32, #tpu.memory_space<vmem>>, vector<1x8x32xf32>
      %22 = vector.shape_cast %21 : vector<1x8x32xf32> to vector<8x32xf32>
      %c0_13 = arith.constant 0 : index
      %c0_14 = arith.constant 0 : index
      %23 = vector.load %arg5[%c0_13, %c0_14] : memref<2x32xf32, #tpu.memory_space<vmem>>, vector<2x32xf32>
      %24 = vector.extract_strided_slice %23 {offsets = [0, 0], sizes = [1, 32], strides = [1, 1]} : vector<2x32xf32> to vector<1x32xf32>
      %25 = vector.broadcast %24 : vector<1x32xf32> to vector<8x32xf32>
      %26 = arith.mulf %22, %25 : vector<8x32xf32>
      %c0_15 = arith.constant 0 : index
      %c0_16 = arith.constant 0 : index
      %27 = vector.load %arg8[%c0_15, %c0_16] : memref<16x32xf32, #tpu.memory_space<vmem>>, vector<8x32xf32>
      tpu.vector_store %arg8[%c0_15, %c0_16], %26 {strides = array<i32>} : memref<16x32xf32, #tpu.memory_space<vmem>>, vector<8x32xf32>,
      %28 = vector.extract_strided_slice %23 {offsets = [1, 0], sizes = [1, 32], strides = [1, 1]} : vector<2x32xf32> to vector<1x32xf32>
      %29 = vector.broadcast %28 : vector<1x32xf32> to vector<8x32xf32>
      %30 = arith.mulf %22, %29 : vector<8x32xf32>
      %c8 = arith.constant 8 : index
      %c0_17 = arith.constant 0 : index
      %31 = vector.load %arg8[%c8, %c0_17] : memref<16x32xf32, #tpu.memory_space<vmem>>, vector<8x32xf32>
      tpu.vector_store %arg8[%c8, %c0_17], %30 {strides = array<i32>} : memref<16x32xf32, #tpu.memory_space<vmem>>, vector<8x32xf32>,
    } else {
    }
    %c0 = arith.constant 0 : index
    %c0_1 = arith.constant 0 : index
    %3 = vector.load %arg8[%c0, %c0_1] : memref<16x32xf32, #tpu.memory_space<vmem>>, vector<16x32xf32>
    %c0_2 = arith.constant 0 : index
    %c0_3 = arith.constant 0 : index
    %c0_4 = arith.constant 0 : index
    %4 = vector.load %arg4[%c0_2, %c0_3, %c0_4] : memref<1x8x32xf32, #tpu.memory_space<vmem>>, vector<1x8x32xf32>
    %5 = vector.shape_cast %4 : vector<1x8x32xf32> to vector<8x32xf32>
    %cst = arith.constant dense<0.000000e+00> : vector<16x8xf32>
    %6 = tpu.matmul %3, %5, %cst {dimension_numbers = #tpu.dot_dimension_numbers<[1], [1], [0], [0], [0, 0, 1, 0], [], []>} : vector<16x32xf32>, vector<8x32xf32>, vector<16x8xf32> -> vector<16x8xf32>
    %7 = tpu.iota {dimensions = array<i32: 0>} : vector<16x1xi32>
    %c8_i32 = arith.constant 8 : i32
    %8 = vector.broadcast %c8_i32 : i32 to vector<16x1xi32>
    %9 = arith.cmpi slt, %7, %8 : vector<16x1xi32>
    %c0_5 = arith.constant 0 : index
    %10 = memref.load %arg6[%c0_5] : memref<2xf32, #tpu.memory_space<smem>>
    %c1 = arith.constant 1 : index
    %11 = memref.load %arg6[%c1] : memref<2xf32, #tpu.memory_space<smem>>
    %12 = vector.broadcast %10 : f32 to vector<16x1xf32>
    %13 = vector.broadcast %11 : f32 to vector<16x1xf32>
    %14 = arith.select %9, %12, %13 : vector<16x1xi1>, vector<16x1xf32>
    %15 = vector.broadcast %14 : vector<16x1xf32> to vector<16x8xf32>
    %16 = arith.addf %6, %15 : vector<16x8xf32>
    %17 = vector.shape_cast %16 : vector<16x8xf32> to vector<2x8x8xf32>
    %c0_6 = arith.constant 0 : index
    %c0_7 = arith.constant 0 : index
    %c0_8 = arith.constant 0 : index
    %c0_9 = arith.constant 0 : index
    %18 = vector.load %arg7[%c0_6, %c0_7, %c0_8, %c0_9] : memref<1x2x8x8xf32, #tpu.memory_space<vmem>>, vector<1x2x8x8xf32>
    %19 = vector.shape_cast %18 : vector<1x2x8x8xf32> to vector<2x8x8xf32>
    %20 = vector.shape_cast %17 : vector<2x8x8xf32> to vector<1x2x8x8xf32>
    tpu.vector_store %arg7[%c0_6, %c0_7, %c0_8, %c0_9], %20 {strides = array<i32>} : memref<1x2x8x8xf32, #tpu.memory_space<vmem>>, vector<1x2x8x8xf32>,
    return
  }
  func.func @transform_0(%arg0: i32, %arg1: i32, %arg2: i32) -> (i32, i32, i32) {
    %c0_i32 = arith.constant 0 : i32
    %c0_i32_0 = arith.constant 0 : i32
    return %arg0, %arg1, %c0_i32 : i32, i32, i32
  }
  func.func @transform_1(%arg0: i32, %arg1: i32, %arg2: i32) -> (i32, i32, i32) {
    %c0_i32 = arith.constant 0 : i32
    %c0_i32_0 = arith.constant 0 : i32
    return %arg0, %arg2, %c0_i32 : i32, i32, i32
  }
  func.func @transform_2(%arg0: i32, %arg1: i32, %arg2: i32) -> (i32, i32) {
    %c0_i32 = arith.constant 0 : i32
    %c0_i32_0 = arith.constant 0 : i32
    %c0_i32_1 = arith.constant 0 : i32
    return %c0_i32, %c0_i32_0 : i32, i32
  }
  func.func @transform_3(%arg0: i32, %arg1: i32, %arg2: i32) -> i32 {
    %c0_i32 = arith.constant 0 : i32
    %c0_i32_0 = arith.constant 0 : i32
    return %c0_i32 : i32
  }
  func.func @transform_4(%arg0: i32, %arg1: i32, %arg2: i32) -> (i32, i32, i32, i32) {
    %c0_i32 = arith.constant 0 : i32
    %c0_i32_0 = arith.constant 0 : i32
    return %arg0, %c0_i32, %arg1, %arg2 : i32, i32, i32, i32
  }
}

</mosaic_0001>

<bundles_post_ra>
// kernel: protein_contact_map_decoder.1
= control target key start
LH: loop header
LB: loop body
LE: loop exit
PB: predicated region body
PF: predicated region fallthrough
CT: control target
= control target key end

     0   :  { %s970_s0 = inlined_call_operand.hbm [shape: f32[2,8,32], index: 0, kind: input, shape index: {}, may-alias: {0,1}]   ;;  %s971_s1 = inlined_call_operand.hbm [shape: f32[2,8,32], index: 1, kind: input, shape index: {}, may-alias: {0,1}]   ;;  %s972_s2 = inlined_call_operand.hbm [shape: f32[2,32], index: 2, kind: input, shape index: {}]   ;;  %s973_s3 = inlined_call_operand.vmem [shape: f32[2], index: 3, kind: input, shape index: {}]   ;;  %s974_s4 = inlined_call_operand.vmem [shape: f32[2,2,8,8], index: 4, kind: output, shape index: {}]  }
   0x1   :  { %976 = sst [smem:[#allocation14_spill]] %s972_s2 }
   0x2   :  { %9 = vsyncpa [#allocation4], 0 }
   0x3   :  { %11 = vsyncpa [#allocation4 + $0x1], 0 }
   0x4   :  { %12 = vsyncpa [#allocation7], 0 }
   0x5   :  { %14 = vsyncpa [#allocation7 + $0x1], 0 }
   0x6   :  { %15 = vsyncpa [#allocation5], 0  ;;  %s838_s15 = smov 0   ;;  %s840_s16 = smov 0  }
   0x7   :  { %s842_s17 = smov 0   ;;  %s844_s18 = smov 0  }
   0x8   :  { %s846_s19 = smov 0   ;;  %s848_s20 = smov 0  }
   0x9 LB: > { %s975_s21 = sadd.s32 4294967295, %s809_s20   ;;  %p62_p0 = scmp.ne.s32.totalorder %s793_s16, %s789_s15  ;;  %s809_s20 = sphi %s848_s20, %s21_s20   ;;  %s805_s19 = sphi %s846_s19, %s988_s19   ;;  %s801_s18 = sphi %s844_s18, %s987_s18   ;;  %s797_s17 = sphi %s842_s17, %s986_s17   ;;  %s793_s16 = sphi %s840_s16, %s985_s16   ;;  %s789_s15 = sphi %s838_s15, %s984_s15  }
   0xa   : > { %p870_p1 = scmp.eq.s32.totalorder %s975_s21, 0  ;;  %p538_p2 = scmp.ge.s32.totalorder %s809_s20, 1 }
   0xb   : > { %p173_p3 = scmp.lt.s32.totalorder %s809_s20, 3  ;;  %s979_s2 = sld [smem:[#allocation14_spill]] }
   0xc   : > { %p878_p4 = por %p870_p1, %p62_p0  ;;  %s811_s28 = smov [#allocation8]  }
   0xd   : > { %p885_p5 = pnand %p538_p2, %p173_p3  ;;  %s187_s29 = sshll.u32 %s811_s28, 4  ;;  %s188_s29 = int_to_ptr.vmem [resolvable:$true] %s187_s29 }
   0xe   : > { %s197_s6 = sshll.u32 %s973_s3, 4  ;;  %s812_s7 = smov [#allocation9]   ;;  %s198_s6 = int_to_ptr.vmem [resolvable:$true] %s197_s6 }
   0xf   : > { %p573_p6 = pneg %p885_p5  ;;  %s40_s8 = sadd.s32 1, %s805_s19 }
  0x10   : > { %s49_s9 = sadd.s32 1, %s797_s17  ;;  %p42_p8 = scmp.ge.s32.totalorder %s40_s8, 2 }
  0x11   : > { %s185_s26 = sshll.u32 %s979_s2, 4  ;;  %p574_p7 = pnand %p573_p6, %p870_p1  ;;  %s186_s26 = int_to_ptr.hbm [resolvable:$true] %s185_s26 }
  0x12   : > { %p56_p9 = scmp.ne.s32.totalorder %s797_s17, %s793_s16  ;;  %p57_p10 = scmp.eq.s32.totalorder %s809_s20, 0 }
  0x13   : > { %576 = dma.hbm_to_vmem [thread:$0]  (!%p574_p7), %s186_s26, 32, %s188_s29, [#allocation7]  }
  0x14   : > { %579 = dma.vmem_to_smem (!%p574_p7), %s198_s6, 16, %s812_s7, [#allocation5]  }
  0x15   : > { %p589_p11 = scmp.lt.s32.totalorder %s809_s20, 2  ;;  %s990_s8 = smov (%p42_p8, %s40_s8), 0 }
  0x16   : > { %p904_p12 = por %p57_p10, %p56_p9  ;;  %s208_s11 = sand.u32 1, %s797_s17  }
  0x17   : > { %s44_s12 = ssub.s32 %s805_s19, %s990_s8  ;;  %s542_s13 = sshll.u32 %s208_s11, 3 }
  0x18   : > { %p47_p13 = scmp.eq.s32.totalorder %s44_s12, 0  ;;  %s543_s14 = sshll.u32 %s805_s19, 3 }
  0x19   : > { %s217_s26 = scalar_lea.hbm %s970_s0, %s543_s14  ;;  %s212_s28 = scalar_lea.vmem [#allocation3], %s542_s13 }
  0x1a   : > { %s913_s15 = scalar_select %p47_p13, %s797_s17, %s49_s9  }
  0x1b   : > { %s221_s29 = sshll.u32 %s212_s28, 4  ;;  %s219_s30 = sshll.u32 %s217_s26, 4  ;;  %s222_s29 = int_to_ptr.vmem [resolvable:$true] %s221_s29  ;;  %s220_s30 = int_to_ptr.hbm [resolvable:$true] %s219_s30 }
  0x1c   : > { %p581_p0 = pnand %p589_p11, %p904_p12  ;;  %s237_s7 = scalar_lea.hbm %s971_s1, %s543_s14 }
  0x1d   : > { %s228_s12 = sand.u32 1, %s809_s20   ;;  %s209_s21 = scalar_lea.sflag [#allocation4], %s208_s11 }
  0x1e   : > { %583 = dma.hbm_to_vmem [thread:$0]  (!%p581_p0), %s220_s30, 128, %s222_s29, %s209_s21  }
  0x1f   : > { %s239_s9 = sshll.u32 %s237_s7, 4  ;;  %s232_s2 = scalar_lea.vmem [#allocation6], %s542_s13  ;;  %s240_s9 = int_to_ptr.hbm [resolvable:$true] %s239_s9 }
  0x20   : > { %s241_s24 = sshll.u32 %s232_s2, 4  ;;  %s229_s25 = scalar_lea.sflag [#allocation7], %s228_s12  ;;  %s242_s24 = int_to_ptr.vmem [resolvable:$true] %s241_s24 }
  0x21   : > { %586 = dma.hbm_to_vmem [thread:$0]  (!%p581_p0), %s240_s9, 128, %s242_s24, %s229_s25  }
  0x22   : > { %250 = sbr.rel (%p885_p5) target bundleno = 194 (0xc2), region = 36  ;;  %s252_s10 = sand.u32 (!%p885_p5), 1, %s793_s16  }
  0x23   : > { %s547_s26 = sshll.u32 (!%p885_p5), %s252_s10, 3  ;;  %s253_s28 = scalar_lea.sflag (!%p885_p5), [#allocation4], %s252_s10 }
  0x24   : > { %s256_s5 = scalar_lea.vmem (!%p885_p5), [#allocation3], %s547_s26 }
  0x27   : > { %772 = dma.done.wait (%p878_p4), %s253_s28, 128  }
  0x28   : > { %774 = vsyncadd (%p878_p4), %s253_s28, 4294967168  ;;  %s982_s21 = sadd.s32 4294967295, %s809_s20   ;;  %s266_s13 = scalar_lea.vmem [#allocation6], %s547_s26 }
  0x29   : > { %s262_s2 = sand.u32 1, %s982_s21  }
  0x2a   : > { %s263_s11 = scalar_lea.sflag [#allocation7], %s262_s2 }
  0x2b   : > { %776 = dma.done.wait (%p878_p4), %s263_s11, 128  }
  0x2c   : > { %778 = vsyncadd (%p878_p4), %s263_s11, 4294967168 }
  0x2d   : > { %780 = dma.done.wait (%p870_p1), [#allocation7], 32  }
  0x2e   : > { %782 = vsyncadd (%p870_p1), [#allocation7], 4294967264 }
  0x2f   : > { %784 = dma.done.wait (%p870_p1), [#allocation5], 16  }
  0x30   : > { %786 = vsyncadd (%p870_p1), [#allocation5], 4294967280 }
  0x31   : > { %282 = sfence }
  0x32   : > { %v329_v0 = vld [vmem:[%s256_s5] sm:$0xff]  ;;  %vm333_vm0 = vcmask 261120   ;;  %v340_v2 = vld [vmem:[%s266_s13] sm:$0xff]  ;;  %p314_p1 = scmp.lt.s32.totalorder %s801_s18, 1  ;;  %s346_s22 = sld [smem:[#allocation9]]  ;;  %vm385_vm1 = vcmask 64512  }
  0x33   : > { %v330_v1 = vld [vmem:[#allocation8] sm:$0x3]  ;;  %554 = vmatpush.xpose.msk.msra.mxu0 %vm333_vm0, %v340_v2  ;;  %560 = vmatpush.xpose.msk.msra.mxu1 %vm333_vm0, %v340_v2  ;;  %s553_s23 = sld [smem:[#allocation9 + $0x1]] }
  0x34   : > { %v331_v3 = vperm.slane %v330_v1, 0  ;;  %v335_v4 = vperm.slane %v330_v1, 1  ;;  %s992_s18 = smov (!%p314_p1, %s801_s18), 1 }
  0x35   : > { %s559_s27 = sshll.u32 %s992_s18, 4 }
  0x36   : > { %v332_v5 = vmul.f32 %v331_v3, %v329_v0  ;;  %v336_v6 = vmul.f32 %v335_v4, %v329_v0  ;;  %s324_s30 = scalar_lea.vmem %s974_s4, %s559_s27 }
  0x38   : > { %334 = vst.msk [vmem:[#allocation2] sm:$0xff] %vm333_vm0, %v332_v5  ;;  %v348_v9 = vstv %s346_s22 }
  0x39   : > { %337 = vst.msk [vmem:[#allocation2 + $0x8] sm:$0xff] %vm333_vm0, %v336_v6  ;;  %v349_v10 = vstv %s553_s23 }
  0x3f   : > { %v338_v7 = vld [vmem:[#allocation2] sm:$0xff] }
  0x40   : > { %555 = vmatmul.msk.f32.vlgmr.msra.gmra.mxu0 %vm333_vm0, %v338_v7  ;;  %v339_v8 = vld [vmem:[#allocation2 + $0x8] sm:$0xff] }
  0x41   : > { %556 = vmatmul.msk.f32.vlgmr.msra.gmra.mxu1 %vm333_vm0, %v339_v8 }
  0xbd   : > { %v379_v11 = vpop.f32.mrf.mxu0 }
  0xbe   : > { %v380_v12 = vadd.f32 %v379_v11, %v348_v9  ;;  %v382_v13 = vpop.f32.mrf.mxu1 }
  0xbf   : > { %v383_v14 = vadd.f32 %v382_v13, %v349_v10 }
  0xc0   : > { %386 = vst.msk [vmem:[%s324_s30] sm:$0xff] %vm385_vm1, %v380_v12 }
  0xc1   : > { %387 = vst.msk [vmem:[%s324_s30 + $0x8] sm:$0xff] %vm385_vm1, %v383_v14 }
  0xc2 PF: > { %s21_s20 = sadd.s32 1, %s809_s20   ;;  %s983_s18 = smov %s913_s15 }
  0xc3   : > { %p18_p2 = scmp.ge.s32.totalorder %s21_s20, 4   ;;  %s984_s15 = smov %s793_s16 }
  0xc4   : > { %s985_s16 = smov %s797_s17  ;;  %s986_s17 = smov %s983_s18 }
  0xc5   : > { %s987_s18 = smov %s805_s19  ;;  %s988_s19 = smov %s990_s8 }
  0xc6   :  { %20 = sbr.rel (!%p18_p2) target bundleno = 9 (0x9), region = 102 }
  0xcb   :  { %421 = vsyncpa [#allocation4], 1 }
  0xcc   :  { %423 = vsyncpa [#allocation4 + $0x1], 1 }
  0xcd   :  { %424 = vsyncpa [#allocation7], 1 }
  0xce   :  { %426 = vsyncpa [#allocation7 + $0x1], 1 }
  0xcf   :  { %427 = vsyncpa [#allocation5], 1 }
  0xd0   :  { %429 = vsyncpa [#allocation5 + $0x1], 1 }

</bundles_post_ra>
